<compile_context>
chip_gen: v7x
topology: tpu7x:2x2x1
jax: 0.10.0
libtpu: 0.0.40
codegen_flags: <defaults>
</compile_context>

<pallas_src>
import functools

import jax
import jax.numpy as jnp
from jax.experimental import pallas as pl
from jax.experimental.pallas import tpu as pltpu


def focal_loss_kernel(x_ref, t_ref, colsum_ref, acc_ref, *, gamma):
    """Accumulate per-class sums of the (unweighted) focal loss over row tiles."""
    t_idx = pl.program_id(1)

    @pl.when(t_idx == 0)
    def _():
        acc_ref[...] = jnp.zeros_like(acc_ref)

    x = x_ref[...].astype(jnp.float32)        # (tn, C) logits
    t = t_ref[...]                            # (tn, 1) int32 targets (-1 = ignore/pad)

    # Global class ids along the lane axis (C is kept whole per block).
    cls = jax.lax.broadcasted_iota(jnp.int32, x.shape, 1)

    # Numerically stable log-probabilities (2 EUP ops total):
    #   lp = log(sigmoid(x)) = min(x, 0) - log(1 + exp(-|x|))
    #   lq = log(1 - sigmoid(x)) = lp - x            (VPU only)
    ez = jnp.exp(-jnp.abs(x))
    lp = jnp.minimum(x, 0.0) - jnp.log(1.0 + ez)
    lq = lp - x

    g = float(gamma)
    if g == 0.0:
        term1, term2 = lp, lq
    elif g.is_integer() and 1.0 <= g <= 4.0:
        # Integer gamma: powers via plain VPU multiplies (no float pow / extra EUP).
        p = jnp.exp(lp)                       # sigmoid(x)
        q = 1.0 - p                           # 1 - sigmoid(x)
        pg, qg = p, q
        for _ in range(int(g) - 1):
            pg = pg * p
            qg = qg * q
        term1 = qg * lp                       # (1-p)^g * log(p)
        term2 = pg * lq                       # p^g * log(1-p)
    else:
        term1 = jnp.exp(g * lq) * lp
        term2 = jnp.exp(g * lp) * lq

    # Select instead of mask-multiply: avoids 0 * (-inf) -> NaN, fewer VALU ops.
    sel = jnp.where(t == cls, term1, jnp.where(t >= 0, term2, 0.0))

    # Per-class partial sums; weight / final reduce / mean are hoisted to the end.
    acc_ref[...] += jnp.sum(sel, axis=0, keepdims=True)

    @pl.when(t_idx == pl.num_programs(1) - 1)
    def _():
        colsum_ref[0] = -acc_ref[...]         # loss_tmp = -(...), applied once


def focal_loss(x, target, weight, gamma=2.0, tn=None,
               vmem_limit_bytes=32 * 1024 * 1024):
    """Pallas FocalLoss.forward.

    x: (N, C) logits (any float dtype; cast to f32 in-kernel),
    target: (N,) int class ids (-1 = ignore), weight: (C,) per-class weight.
    """
    N, C = x.shape

    # --- pick the row tile: as large as fits a modest double-buffered VMEM budget.
    if tn is None:
        per_buffer_budget = 6 * 1024 * 1024            # bytes per logits buffer
        row_bytes = C * max(jnp.dtype(x.dtype).itemsize, 4)   # conservative
        tn = min(1024, max(8, per_buffer_budget // row_bytes))
    tn = max(8, (int(tn) // 8) * 8)                    # sublane multiple
    tn = min(tn, ((N + 7) // 8) * 8)                   # never bigger than padded N

    n_tiles = pl.cdiv(N, tn)
    P = 2 if n_tiles >= 2 else 1                       # v7x: one slice per TensorCore
    T = pl.cdiv(n_tiles, P)
    Np = P * T * tn

    # --- pad ragged batch: padded rows use target = -1 -> contribute exactly 0.
    if Np != N:
        pad = Np - N
        x = jnp.pad(x, ((0, pad), (0, 0)))
        target = jnp.pad(target.astype(jnp.int32), ((0, pad),), constant_values=-1)
    t2 = target.reshape(Np, 1).astype(jnp.int32)

    colsums = pl.pallas_call(
        functools.partial(focal_loss_kernel, gamma=float(gamma)),
        out_shape=jax.ShapeDtypeStruct((P, 1, C), jnp.float32),
        grid_spec=pltpu.PrefetchScalarGridSpec(
            num_scalar_prefetch=0,
            grid=(P, T),
            in_specs=[
                pl.BlockSpec((tn, C), lambda p, t: (p * T + t, 0)),   # logits tile
                pl.BlockSpec((tn, 1), lambda p, t: (p * T + t, 0)),   # targets tile
            ],
            out_specs=pl.BlockSpec((1, 1, C), lambda p, t: (p, 0, 0)),
            scratch_shapes=[pltpu.VMEM((1, C), jnp.float32)],
        ),
        compiler_params=pltpu.CompilerParams(
            dimension_semantics=("parallel", "arbitrary"),
            vmem_limit_bytes=vmem_limit_bytes,
        ),
    )(x, t2)

    # Tiny epilogue, executed once in XLA: apply class weight, mean over N*C.
    per_class = jnp.sum(colsums.reshape(-1, C), axis=0)            # (C,)
    total = jnp.sum(per_class * weight.astype(jnp.float32))
    return total / jnp.float32(N * C)


if __name__ == "__main__":
    key = jax.random.PRNGKey(0)
    kx, kt, kw = jax.random.split(key, 3)

    gamma = 2.0
    C = 128

    def reference(x, target, weight, gamma):
        # Plain-JAX mirror of the PyTorch forward.
        p = jax.nn.sigmoid(x)
        cls = jnp.arange(x.shape[1])[None, :]
        t = target[:, None]
        term1 = (1.0 - p) ** gamma * jnp.log(p)
        term2 = p ** gamma * jnp.log(1.0 - p)
        loss_tmp = (-(t == cls).astype(jnp.float32) * term1
                    - ((t != cls) & (t >= 0)).astype(jnp.float32) * term2)
        return jnp.mean(weight[None, :] * loss_tmp)

    # Shared per-class weight (the module's self.weight), shape (C,).
    w = jax.random.uniform(kw, (C,), minval=0.5, maxval=1.5, dtype=jnp.float32)

    # Case 1: multi-tile grid with two parallel batch slices (tn forced small
    # so grid = (P=2, T=2) and the accumulator path is exercised).
    N1 = 64
    x1 = jax.random.normal(kx, (N1, C), dtype=jnp.float32)
    t1 = jax.random.randint(kt, (N1,), minval=-1, maxval=C, dtype=jnp.int32)
    out1 = jax.block_until_ready(focal_loss(x1, t1, w, gamma=gamma, tn=16))
    ref1 = reference(x1, t1, w, gamma)
    assert jnp.allclose(out1, ref1, rtol=1e-5, atol=1e-5), (out1, ref1)

    # Case 2: ragged batch (N not a multiple of 8), automatic tile size (padding path).
    N2 = 30
    x2 = jax.random.normal(jax.random.fold_in(kx, 1), (N2, C), dtype=jnp.float32)
    t2 = jax.random.randint(jax.random.fold_in(kt, 1), (N2,),
                            minval=-1, maxval=C, dtype=jnp.int32)
    out2 = jax.block_until_ready(focal_loss(x2, t2, w, gamma=gamma))
    ref2 = reference(x2, t2, w, gamma)
    assert jnp.allclose(out2, ref2, rtol=1e-5, atol=1e-5), (out2, ref2)

    print("KERNEL_OK")
</pallas_src>

<mosaic_0001>
module attributes {stable_mosaic.version = 11 : i64} {
  func.func @focal_loss_kernel(%arg0: i32, %arg1: i32, %arg2: memref<16x128xf32, #tpu.memory_space<vmem>>, %arg3: memref<16x1xi32, #tpu.memory_space<vmem>>, %arg4: memref<1x1x128xf32, #tpu.memory_space<vmem>>, %arg5: memref<1x128xf32, #tpu.memory_space<vmem>>) attributes {dimension_semantics = [#tpu.dimension_semantics<parallel>, #tpu.dimension_semantics<arbitrary>], iteration_bounds = array<i64: 2, 2>, scalar_prefetch = 0 : i64, scratch_operands = 1 : i64, tpu.core_type = #tpu.core_type<tc>, window_params = [{transform_indices = @transform_0, window_bounds = array<i64: 16, 128>}, {transform_indices = @transform_1, window_bounds = array<i64: 16, 1>}, {transform_indices = @transform_2, window_bounds = array<i64: 1, 1, 128>}]} {
    %c0_i32 = arith.constant 0 : i32
    %0 = arith.cmpi eq, %arg1, %c0_i32 : i32
    %1 = arith.extui %0 : i1 to i32
    %c0_i32_0 = arith.constant 0 : i32
    %2 = arith.cmpi ne, %1, %c0_i32_0 : i32
    scf.if %2 {
      %cst_15 = arith.constant 0.000000e+00 : f32
      %41 = vector.broadcast %cst_15 : f32 to vector<1x128xf32>
      %c0_16 = arith.constant 0 : index
      %c0_17 = arith.constant 0 : index
      %42 = vector.load %arg5[%c0_16, %c0_17] : memref<1x128xf32, #tpu.memory_space<vmem>>, vector<1x128xf32>
      tpu.vector_store %arg5[%c0_16, %c0_17], %41 {strides = array<i32>} : memref<1x128xf32, #tpu.memory_space<vmem>>, vector<1x128xf32>,
    } else {
    }
    %c0 = arith.constant 0 : index
    %c0_1 = arith.constant 0 : index
    %3 = vector.load %arg2[%c0, %c0_1] : memref<16x128xf32, #tpu.memory_space<vmem>>, vector<16x128xf32>
    %c0_2 = arith.constant 0 : index
    %c0_3 = arith.constant 0 : index
    %4 = vector.load %arg3[%c0_2, %c0_3] : memref<16x1xi32, #tpu.memory_space<vmem>>, vector<16x1xi32>
    %5 = tpu.iota {dimensions = array<i32: 1>} : vector<16x128xi32>
    %6 = math.absf %3 : vector<16x128xf32>
    %cst = arith.constant 0.000000e+00 : f32
    %7 = vector.broadcast %cst : f32 to vector<16x128xf32>
    %8 = arith.subf %7, %6 : vector<16x128xf32>
    %9 = math.exp %8 : vector<16x128xf32>
    %cst_4 = arith.constant 0.000000e+00 : f32
    %10 = vector.broadcast %cst_4 : f32 to vector<16x128xf32>
    %11 = arith.minimumf %3, %10 : vector<16x128xf32>
    %cst_5 = arith.constant 1.000000e+00 : f32
    %12 = vector.broadcast %cst_5 : f32 to vector<16x128xf32>
    %13 = arith.addf %12, %9 : vector<16x128xf32>
    %14 = math.log %13 : vector<16x128xf32>
    %15 = arith.subf %11, %14 : vector<16x128xf32>
    %16 = arith.subf %15, %3 : vector<16x128xf32>
    %17 = math.exp %15 : vector<16x128xf32>
    %cst_6 = arith.constant 1.000000e+00 : f32
    %18 = vector.broadcast %cst_6 : f32 to vector<16x128xf32>
    %19 = arith.subf %18, %17 : vector<16x128xf32>
    %20 = arith.mulf %17, %17 : vector<16x128xf32>
    %21 = arith.mulf %19, %19 : vector<16x128xf32>
    %22 = arith.mulf %21, %15 : vector<16x128xf32>
    %23 = arith.mulf %20, %16 : vector<16x128xf32>
    %24 = vector.broadcast %4 : vector<16x1xi32> to vector<16x128xi32>
    %25 = arith.cmpi eq, %24, %5 : vector<16x128xi32>
    %c0_i32_7 = arith.constant 0 : i32
    %26 = vector.broadcast %c0_i32_7 : i32 to vector<16x1xi32>
    %27 = arith.cmpi sge, %4, %26 : vector<16x1xi32>
    %cst_8 = arith.constant 0.000000e+00 : f32
    %28 = vector.shape_cast %27 : vector<16x1xi1> to vector<16x1xi1>
    %29 = vector.broadcast %28 : vector<16x1xi1> to vector<16x128xi1>
    %30 = vector.broadcast %cst_8 : f32 to vector<16x128xf32>
    %31 = arith.select %29, %23, %30 : vector<16x128xi1>, vector<16x128xf32>
    %32 = arith.select %25, %22, %31 : vector<16x128xi1>, vector<16x128xf32>
    %c0_9 = arith.constant 0 : index
    %c0_10 = arith.constant 0 : index
    %33 = vector.load %arg5[%c0_9, %c0_10] : memref<1x128xf32, #tpu.memory_space<vmem>>, vector<1x128xf32>
    %cst_11 = arith.constant dense<0.000000e+00> : vector<128xf32>
    %34 = vector.multi_reduction <add>, %32, %cst_11 [0] : vector<16x128xf32> to vector<128xf32>
    %35 = vector.shape_cast %34 : vector<128xf32> to vector<1x128xf32>
    %36 = arith.addf %33, %35 : vector<1x128xf32>
    %c0_12 = arith.constant 0 : index
    %c0_13 = arith.constant 0 : index
    %37 = vector.load %arg5[%c0_12, %c0_13] : memref<1x128xf32, #tpu.memory_space<vmem>>, vector<1x128xf32>
    tpu.vector_store %arg5[%c0_12, %c0_13], %36 {strides = array<i32>} : memref<1x128xf32, #tpu.memory_space<vmem>>, vector<1x128xf32>,
    %c1_i32 = arith.constant 1 : i32
    %38 = arith.cmpi eq, %arg1, %c1_i32 : i32
    %39 = arith.extui %38 : i1 to i32
    %c0_i32_14 = arith.constant 0 : i32
    %40 = arith.cmpi ne, %39, %c0_i32_14 : i32
    scf.if %40 {
      %c0_15 = arith.constant 0 : index
      %c0_16 = arith.constant 0 : index
      %41 = vector.load %arg5[%c0_15, %c0_16] : memref<1x128xf32, #tpu.memory_space<vmem>>, vector<1x128xf32>
      %cst_17 = arith.constant 0.000000e+00 : f32
      %42 = vector.broadcast %cst_17 : f32 to vector<1x128xf32>
      %43 = arith.subf %42, %41 : vector<1x128xf32>
      %c0_18 = arith.constant 0 : index
      %c0_19 = arith.constant 0 : index
      %c0_20 = arith.constant 0 : index
      %44 = vector.load %arg4[%c0_18, %c0_19, %c0_20] : memref<1x1x128xf32, #tpu.memory_space<vmem>>, vector<1x1x128xf32>
      %45 = vector.shape_cast %44 : vector<1x1x128xf32> to vector<1x128xf32>
      %46 = vector.shape_cast %43 : vector<1x128xf32> to vector<1x1x128xf32>
      tpu.vector_store %arg4[%c0_18, %c0_19, %c0_20], %46 {strides = array<i32>} : memref<1x1x128xf32, #tpu.memory_space<vmem>>, vector<1x1x128xf32>,
    } else {
    }
    return
  }
  func.func @transform_0(%arg0: i32, %arg1: i32) -> (i32, i32) {
    %c2_i32 = arith.constant 2 : i32
    %0 = arith.muli %arg0, %c2_i32 : i32
    %1 = arith.addi %0, %arg1 : i32
    %c0_i32 = arith.constant 0 : i32
    %c0_i32_0 = arith.constant 0 : i32
    return %1, %c0_i32 : i32, i32
  }
  func.func @transform_1(%arg0: i32, %arg1: i32) -> (i32, i32) {
    %c2_i32 = arith.constant 2 : i32
    %0 = arith.muli %arg0, %c2_i32 : i32
    %1 = arith.addi %0, %arg1 : i32
    %c0_i32 = arith.constant 0 : i32
    %c0_i32_0 = arith.constant 0 : i32
    return %1, %c0_i32 : i32, i32
  }
  func.func @transform_2(%arg0: i32, %arg1: i32) -> (i32, i32, i32) {
    %c0_i32 = arith.constant 0 : i32
    %c0_i32_0 = arith.constant 0 : i32
    %c0_i32_1 = arith.constant 0 : i32
    return %arg0, %c0_i32, %c0_i32_0 : i32, i32, i32
  }
}

</mosaic_0001>

<bundles_post_ra>
// kernel: tpu_custom_call.1
= control target key start
LH: loop header
LB: loop body
LE: loop exit
PB: predicated region body
PF: predicated region fallthrough
CT: control target
= control target key end

     0   :  { %7 = vsyncpa [#allocation4], 0  ;;  %s742_s0 = inlined_call_operand.vmem [shape: f32[64,128], index: 0, kind: input, shape index: {}]   ;;  %s743_s1 = inlined_call_operand.vmem [shape: s32[64,1], index: 1, kind: input, shape index: {}]   ;;  %s744_s2 = inlined_call_operand.hbm [shape: f32[2,1,128], index: 2, kind: output, shape index: {}]  }
   0x1   :  { %9 = vsyncpa [#allocation4 + $0x1], 0  ;;  %s603_s9 = smov 0   ;;  %s605_s10 = smov 0  }
   0x2   :  { %s607_s11 = smov 0   ;;  %s609_s12 = smov 0  }
   0x3   :  { %s611_s13 = smov 0   ;;  %s613_s14 = smov 0  }
   0x4   :  { %s615_s15 = smov 0   ;;  %s617_s16 = smov 0  }
   0x5 LB: > { %s382_s17 = sadd.s32 4294967295, %s583_s16   ;;  %s383_s18 = sadd.s32 4294967294, %s583_s16   ;;  %s583_s16 = sphi %s617_s16, %s15_s16   ;;  %s579_s15 = sphi %s615_s15, %s753_s15   ;;  %s575_s14 = sphi %s613_s14, %s752_s14   ;;  %s571_s13 = sphi %s611_s13, %s751_s13   ;;  %s567_s12 = sphi %s609_s12, %s750_s12   ;;  %s563_s11 = sphi %s607_s11, %s749_s11   ;;  %s559_s10 = sphi %s605_s10, %s748_s10   ;;  %s555_s9 = sphi %s603_s9, %s747_s9  }
   0x6   : > { %s24_s19 = sadd.s32 1, %s575_s14  ;;  %s27_s20 = sadd.s32 1, %s579_s15 }
   0x7   : > { %p25_p0 = scmp.ge.s32.totalorder %s24_s19, 2  ;;  %p104_p1 = scmp.ne.s32.totalorder %s563_s11, %s559_s10 }
   0x8   : > { %p105_p2 = scmp.eq.s32.totalorder %s382_s17, 3  ;;  %p110_p4 = scmp.ne.s32.totalorder %s559_s10, %s555_s9 }
   0x9   : > { %s755_s19 = smov (%p25_p0, %s24_s19), 0  ;;  %s757_s20 = smov (!%p25_p0, %s27_s20), %s579_s15 }
   0xa   : > { %p652_p3 = por %p105_p2, %p104_p1  ;;  %p29_p5 = scmp.ge.s32.totalorder %s757_s20, 2 }
   0xb   : > { %p111_p6 = scmp.eq.s32.totalorder %s383_s18, 3  ;;  %p390_p7 = scmp.ge.s32.totalorder %s583_s16, 1 }
   0xc   : > { %p155_p8 = scmp.lt.s32.totalorder %s583_s16, 5  ;;  %s759_s20 = smov (%p29_p5, %s757_s20), 0 }
   0xd   : > { %p662_p9 = por %p111_p6, %p110_p4  ;;  %s91_s23 = ssub.s32 %s579_s15, %s759_s20 }
   0xe   : > { %p156_p10 = pnand %p390_p7, %p155_p8  ;;  %s94_s24 = sadd.s32 1, %s563_s11 }
   0xf   : > { %p92_p11 = scmp.eq.s32.totalorder %s91_s23, 0  ;;  %s183_s26 = sand.u32 (!%p156_p10), 1, %s559_s10  }
  0x10   : > { %159 = sbr.rel (%p156_p10) target bundleno = 219 (0xdb), region = 28  ;;  %s391_s27 = sshll.u32 (!%p156_p10), %s571_s13, 1 }
  0x11   : > { %s670_s25 = scalar_select %p92_p11, %s563_s11, %s94_s24  }
  0x12   : > { %s186_s28 = sadd.s32 (!%p156_p10), %s567_s12, %s391_s27  ;;  %s683_s17 = scalar_lea.vmem (!%p156_p10), [#allocation3], %s183_s26 }
  0x13   : > { %s392_s29 = sshll.u32 (!%p156_p10), %s186_s28, 1  ;;  %p397_p13 = scmp.ne.s32.totalorder (!%p156_p10), %s567_s12, 0 }
  0x14   : > { %p188_p12 = scmp.lt.s32.totalorder (!%p156_p10), %s392_s29, 7 }
  0x17   : > { %s761_s29 = smov (!%p188_p12, %s392_s29), 7  ;;  %208 = sbr.rel (%p397_p13) target bundleno = 30 (0x1e), region = 32 }
  0x18   : > { %s393_s30 = sshll.u32 %s761_s29, 3  ;;  %v585_v0 = vmov (!%p397_p13), 0.0  }
  0x19   : > { %s191_s5 = scalar_lea.vmem %s742_s0, %s393_s30  ;;  %s201_s8 = scalar_lea.vmem %s743_s1, %s393_s30  ;;  %209 = vst [vmem:[#allocation2] sm:$0x1] (!%p397_p13), %v585_v0 }
  0x1e PF: > { %v212_v1 = vld [vmem:[%s201_s8] sm:$0xff]  ;;  %v213_v2 = vld [vmem:[%s201_s8 + $0x8] sm:$0xff]  ;;  %v586_v3 = vmov 0   ;;  %v214_v32 = vlaneseq  ;;  %p398_p0 = scmp.ne.s32.totalorder %s567_s12, 1 }
  0x1f   : > { %476 = vset.pattern.permute.xlu1 %v586_v3  ;;  %475 = vset.pattern.permute.xlu0 %v586_v3  ;;  %vm258_vm0 = vcmp.ge.s32.totalorder %v212_v1, 0  ;;  %vm259_vm1 = vcmp.ge.s32.totalorder %v213_v2, 0  ;;  %v210_v6 = vld [vmem:[%s191_s5] sm:$0xff]  ;;  %v211_v7 = vld [vmem:[%s191_s5 + $0x8] sm:$0xff] }
  0x20   : > { %251 = vperm.xlu1 %476, %v212_v1   ;;  %v260_v4 = vsel %vm258_vm0, 1, %v586_v3  ;;  %v261_v5 = vsel %vm259_vm1, 1, %v586_v3  ;;  %v216_v8 = vand.u32 2147483647, %v210_v6  ;;  %v217_v9 = vand.u32 2147483647, %v211_v7 }
  0x21   : > { %263 = vperm.xlu0 %475, %v260_v4   ;;  %v224_v20 = vmin.f32 %v210_v6, 0.0  ;;  %v225_v22 = vmin.f32 %v211_v7, 0.0  ;;  %v215_v40 = vand.u32 127, %v214_v32  ;;  %v274_v58 = vld [vmem:[#allocation2] sm:$0x1] }
  0x22   : > { %v218_v10 = vsub.f32 0.0, %v216_v8  ;;  %v219_v11 = vsub.f32 0.0, %v217_v9 }
  0x24   : > { %254 = vperm.xlu1 %476, %v213_v2   ;;  %v220_v12 = vmul.f32 1.442695, %v218_v10  ;;  %v222_v13 = vmul.f32 1.442695, %v219_v11 }
  0x25   : > { %266 = vperm.xlu0 %475, %v261_v5  }
  0x26   : > { %477 = vpow2.f32 %v220_v12 }
  0x27   : > { %479 = vpow2.f32 %v222_v13 }
  0x30   : > { %v478_v14 = vpop.eup %477 }
  0x31   : > { %v480_v15 = vpop.eup %479  ;;  %v226_v16 = vadd.f32 1.0, %v478_v14 }
  0x32   : > { %v227_v17 = vadd.f32 1.0, %v480_v15 }
  0x33   : > { %481 = vlog2.f32 %v226_v16 }
  0x34   : > { %483 = vlog2.f32 %v227_v17 }
  0x3d   : > { %v482_v18 = vpop.eup %481 }
  0x3e   : > { %v484_v19 = vpop.eup %483  ;;  %v229_v21 = vmul.f32 0.6931472, %v482_v18 }
  0x3f   : > { %v231_v23 = vmul.f32 0.6931472, %v484_v19 }
  0x40   : > { %v232_v24 = vsub.f32 %v224_v20, %v229_v21 }
  0x41   : > { %v233_v25 = vsub.f32 %v225_v22, %v231_v23 }
  0x42   : > { %v236_v26 = vmul.f32 1.442695, %v232_v24  ;;  %v234_v33 = vsub.f32 %v232_v24, %v210_v6 }
  0x43   : > { %v238_v27 = vmul.f32 1.442695, %v233_v25  ;;  %v235_v35 = vsub.f32 %v233_v25, %v211_v7 }
  0x44   : > { %485 = vpow2.f32 %v236_v26 }
  0x45   : > { %487 = vpow2.f32 %v238_v27 }
  0x4e   : > { %v486_v28 = vpop.eup %485 }
  0x4f   : > { %v488_v29 = vpop.eup %487  ;;  %v240_v30 = vsub.f32 1.0, %v486_v28  ;;  %v242_v34 = vmul.f32 %v486_v28, %v486_v28 }
  0x50   : > { %v241_v31 = vsub.f32 1.0, %v488_v29  ;;  %v243_v36 = vmul.f32 %v488_v29, %v488_v29 }
  0x51   : > { %v244_v38 = vmul.f32 %v240_v30, %v240_v30  ;;  %v248_v42 = vmul.f32 %v242_v34, %v234_v33 }
  0x52   : > { %v245_v39 = vmul.f32 %v241_v31, %v241_v31  ;;  %v249_v43 = vmul.f32 %v243_v36, %v235_v35 }
  0x53   : > { %v246_v44 = vmul.f32 %v244_v38, %v232_v24 }
  0x54   : > { %v247_v46 = vmul.f32 %v245_v39, %v233_v25 }
  0x9f   : > { %v252_v37 = vpop.permute.xlu1 %251 }
  0xa0   : > { %v264_v41 = vpop.permute.xlu0 %263  ;;  %vm256_vm3 = vcmp.eq.s32.totalorder %v252_v37, %v215_v40 }
  0xa1   : > { %vm268_vm2 = vcmp.eq.s32.totalorder %v264_v41, 1 }
  0xa2   : > { %v270_v47 = vsel %vm268_vm2, %v248_v42, 0.0 }
  0xa3   : > { %v255_v45 = vpop.permute.xlu1 %254  ;;  %v272_v50 = vsel %vm256_vm3, %v246_v44, %v270_v47 }
  0xa4   : > { %v267_v48 = vpop.permute.xlu0 %266  ;;  %vm257_vm5 = vcmp.eq.s32.totalorder %v255_v45, %v215_v40 }
  0xa5   : > { %vm269_vm4 = vcmp.eq.s32.totalorder %v267_v48, 1 }
  0xa6   : > { %v271_v49 = vsel %vm269_vm4, %v249_v43, 0.0 }
  0xa7   : > { %v273_v51 = vsel %vm257_vm5, %v247_v46, %v271_v49 }
  0xa8   : > { %v275_v52 = vadd.f32 %v273_v51, %v272_v50 }
  0xaa   : > { %v276_v53 = vrot.slane %v275_v52, 4 }
  0xac   : > { %v277_v54 = vadd.f32 %v276_v53, %v275_v52 }
  0xae   : > { %v278_v55 = vrot.slane %v277_v54, 2 }
  0xb0   : > { %v279_v56 = vadd.f32 %v278_v55, %v277_v54 }
  0xb2   : > { %v280_v57 = vrot.slane %v279_v56, 1  ;;  %287 = sbr.rel (%p398_p0) target bundleno = 195 (0xc3), region = 36 }
  0xb4   : > { %v281_v59 = vadd.f32 %v280_v57, %v279_v56 }
  0xb6   : > { %v282_v60 = vadd.f32 %v281_v59, %v274_v58 }
  0xb8   : > { %283 = vst [vmem:[#allocation2] sm:$0x1] %v282_v60 }
  0xbf   : > { %v288_v61 = vld [vmem:[#allocation2] sm:$0x1] }
  0xc0   : > { %v289_v62 = vsub.f32 0.0, %v288_v61 }
  0xc2   : > { %290 = vst [vmem:[%s683_s17] sm:$0x1] %v289_v62 }
  0xc3 PF: > { %s399_s18 = sshll.u32 %s571_s13, 4  ;;  %s304_s28 = sshll.u32 %s683_s17, 4  ;;  %s305_s28 = int_to_ptr.vmem [resolvable:$true] %s304_s28 }
  0xc4   : > { %s692_s27 = scalar_lea.hbm %s744_s2, %s399_s18  ;;  %s292_s12 = scalar_lea.sflag [#allocation4], %s183_s26 }
  0xc5   : > { %s489_s29 = scalar_lea.vmem %s305_s28, 16  ;;  %s587_s30 = smov [#allocation3]  }
  0xc6   : > { %p490_p1 = scmp.ne.s32.totalorder %s305_s28, %s489_s29  ;;  %s493_s3 = sshll.u32 %s587_s30, 4  ;;  %s494_s3 = int_to_ptr.vmem [resolvable:$false] %s493_s3 }
  0xc7   : > { %s495_s4 = scalar_lea.vmem %s494_s3, 32  ;;  %p496_p5 = scmp.lt.s32.totalorder %s305_s28, %s494_s3 }
  0xc8   : > { %p491_p2 = pnand %p490_p1, %p652_p3  ;;  %p497_p6 = scmp.lt.s32.totalorder %s495_s4, %s489_s29 }
  0xca   : > { %p492_p4 = pneg %p491_p2  ;;  %p498_p7 = por %p497_p6, %p496_p5 }
  0xcc   : > { %p499_p8 = pnand %p498_p7, %p492_p4 }
  0xce   : > { %502 = shalt.err (!%p499_p8)
}
  0xcf   : > { %s503_s13 = scalar_lea.hbm %s692_s27, 16  ;;  %s507_s6 = scalar_lea.hbm %s744_s2, 32 }
  0xd0   : > { %p504_p10 = scmp.ne.s32.totalorder %s692_s27, %s503_s13  ;;  %p508_p13 = scmp.lt.u32.totalorder %s692_s27, %s744_s2 }
  0xd1   : > { %p509_p0 = scmp.lt.u32.totalorder %s507_s6, %s503_s13  ;;  %p511_p2 = scmp.lt.u32.totalorder %s503_s13, %s692_s27 }
  0xd2   : > { %p505_p11 = pnand %p504_p10, %p652_p3 }
  0xd3   : > { %p510_p1 = por %p509_p0, %p508_p13 }
  0xd4   : > { %p506_p12 = pneg %p505_p11 }
  0xd5   : > { %p512_p4 = por %p511_p2, %p510_p1 }
  0xd7   : > { %p513_p5 = pnand %p512_p4, %p506_p12 }
  0xd9   : > { %516 = shalt.err (!%p513_p5)
}
  0xda   : > { %402 = dma.vmem_to_hbm [thread:$0]  (%p652_p3), %s305_s28, 16, %s692_s27, %s292_s12  }
  0xdb PF: > { %p408_p6 = scmp.ge.s32.totalorder %s583_s16, 2  ;;  %s316_s17 = sand.u32 1, %s555_s9  }
  0xdc   : > { %s317_s18 = scalar_lea.sflag [#allocation4], %s316_s17 }
  0xdd   : > { %p405_p7 = pnand %p408_p6, %p662_p9 }
  0xdf   : > { %550 = dma.done.wait (!%p405_p7), %s317_s18, 16  }
  0xe0   : > { %552 = vsyncadd (!%p405_p7), %s317_s18, 4294967280  ;;  %s15_s16 = sadd.s32 1, %s583_s16   ;;  %s747_s9 = smov %s559_s10 }
  0xe1   : > { %p12_p8 = scmp.ge.s32.totalorder %s15_s16, 6   ;;  %s748_s10 = smov %s563_s11 }
  0xe2   : > { %s749_s11 = smov %s670_s25  ;;  %s750_s12 = smov %s575_s14 }
  0xe3   : > { %s751_s13 = smov %s579_s15  ;;  %s752_s14 = smov %s755_s19 }
  0xe4   : > { %s753_s15 = smov %s759_s20  ;;  %14 = sbr.rel (!%p12_p8) target bundleno = 5 (0x5), region = 74 }
  0xeb   :  { %321 = vsyncpa [#allocation4], 1 }
  0xec   :  { %323 = vsyncpa [#allocation4 + $0x1], 1 }

</bundles_post_ra>
